<compile_context>
chip_gen: v5e
topology: v5e:2x2
jax: 0.10.0
libtpu: 0.0.40
codegen_flags: <defaults>
</compile_context>

<pallas_src>
import functools

import jax
import jax.numpy as jnp
from jax.experimental import pallas as pl
from jax.experimental.pallas import tpu as pltpu

LANE = 128


# ----------------------------------------------------------------------------- helpers
def _round_up(x, m):
    return (x + m - 1) // m * m


def _pad2(x, rows, cols):
    out = jnp.zeros((rows, cols), x.dtype)
    return out.at[: x.shape[0], : x.shape[1]].set(x)


def _vmem_capacity_bytes():
    """Physical VMEM per TensorCore (v5e/v6e: 128 MiB, v7x: 64 MiB)."""
    try:
        cap = int(pltpu.get_tpu_info().vmem_capacity_bytes)
        if cap > 0:
            return cap
    except Exception:
        pass
    return 64 * 1024 * 1024   # conservative fallback = v7x per-core VMEM


# ------------------------------------------------------------------ fused (small) path
def _make_fused_kernel(modes):
    """One kernel computing every NodeUpdate layer; intermediates never leave VMEM."""
    n_upd = len(modes)

    def kernel(*refs):
        out_ref = refs[1 + 4 * n_upd]
        h = refs[0][...]                                       # bf16 features
        for li, mode in enumerate(modes):
            a_ref, norm_ref, w_ref, b_ref = refs[1 + 4 * li: 5 + 4 * li]
            # Message passing (copy_src + fn.sum) == dense adjacency matmul (bf16 MXU).
            agg = jnp.dot(a_ref[...], h, preferred_element_type=jnp.float32)
            # nn.Linear; per-row norm commutes with right-mult by W -> apply after.
            z = jnp.dot(agg.astype(jnp.bfloat16), w_ref[...],
                        preferred_element_type=jnp.float32)
            z = z * norm_ref[...] + b_ref[...]
            if mode == "act":                                  # relu
                h = jnp.maximum(z, 0.0).astype(jnp.bfloat16)
            elif mode == "concat":                             # cat((h, relu(h)), dim=1)
                h = jnp.concatenate([z, jnp.maximum(z, 0.0)],
                                    axis=1).astype(jnp.bfloat16)
            else:                                              # final classifier
                h = z
        out_ref[...] = h.astype(out_ref.dtype)

    return kernel


def _fused_footprint_bytes(feat_pad, layers):
    total = feat_pad.size * feat_pad.dtype.itemsize
    live = 0
    for lyr in layers:
        for name in ("a", "norm", "w", "b"):
            arr = lyr[name]
            total += arr.size * arr.dtype.itemsize
        cols = lyr["w"].shape[1] * (2 if lyr["mode"] == "concat" else 1)
        live = max(live, lyr["a"].shape[0] * cols * 4)
    return total + 4 * live            # + a few live f32 temporaries per layer epilogue


def gcn_infer_fused(feat_pad, layers, vmem_cap):
    modes = tuple(l["mode"] for l in layers)
    last = layers[-1]
    n_out = last["a"].shape[0]
    out_cols = last["w"].shape[1] * (2 if modes[-1] == "concat" else 1)

    args = [feat_pad]
    flops = 0
    bytes_accessed = feat_pad.size * feat_pad.dtype.itemsize
    for lyr in layers:
        a, w = lyr["a"], lyr["w"]
        flops += 2 * a.shape[0] * a.shape[1] * w.shape[0] \
            + 2 * a.shape[0] * w.shape[0] * w.shape[1]
        for name in ("a", "norm", "w", "b"):
            arr = lyr[name]
            bytes_accessed += arr.size * arr.dtype.itemsize
            args.append(arr)
    bytes_accessed += n_out * out_cols * 4

    vmem_limit = min(int(vmem_cap * 0.85),
                     _fused_footprint_bytes(feat_pad, layers) + (16 << 20))

    return pl.pallas_call(
        _make_fused_kernel(modes),
        out_shape=jax.ShapeDtypeStruct((n_out, out_cols), jnp.float32),
        compiler_params=pltpu.CompilerParams(vmem_limit_bytes=vmem_limit),
        cost_estimate=pl.CostEstimate(flops=int(flops), transcendentals=0,
                                      bytes_accessed=int(bytes_accessed)),
    )(*args)


# ------------------------------------------------------------------ tiled (large) path
def _node_update_kernel(a_ref, h_ref, norm_ref, w_ref, b_ref, out_ref, acc_ref,
                        *, mode, f_out):
    k = pl.program_id(1)

    @pl.when(k == 0)
    def _():
        acc_ref[...] = jnp.zeros_like(acc_ref)

    # Message passing (copy_src + fn.sum) == dense adjacency matmul.
    # A and H are both bf16 (A is 0/1 so exact); f32 accumulation on the MXU.
    acc_ref[...] += jnp.dot(a_ref[...], h_ref[...], preferred_element_type=jnp.float32)

    @pl.when(k == pl.num_programs(1) - 1)
    def _():
        # norm is a per-row diagonal scale -> commutes with right-mult by W, so apply it
        # on the (tm, f_out) tile instead of the wider (tm, f_in) aggregate.
        z = jnp.dot(acc_ref[...].astype(jnp.bfloat16), w_ref[...],
                    preferred_element_type=jnp.float32)
        z = z * norm_ref[...] + b_ref[...]
        if mode == "plain":                     # final classifier, no activation
            out_ref[...] = z.astype(out_ref.dtype)
        elif mode == "act":                     # relu
            out_ref[...] = jnp.maximum(z, 0.0).astype(out_ref.dtype)
        else:                                   # "concat": two lane-dense slice stores
            out_ref[:, :f_out] = z.astype(out_ref.dtype)
            out_ref[:, f_out:] = jnp.maximum(z, 0.0).astype(out_ref.dtype)


def _select_tiles(n_dst, n_src, f_in, f_out, out_cols, out_itemsize, vmem_cap,
                  max_tm=None, max_tk=None):
    """Largest (tm, tk) whose double-buffered footprint fits the per-chip VMEM budget.
    tk == n_src (when it fits) makes H fully resident: its block index never changes,
    so Pallas elides every re-fetch."""
    budget = int(vmem_cap * 0.8)
    resident = f_in * f_out * 2 + f_out * 4            # W (bf16) + b (f32), single copy

    tm_cands = [c for c in (1024, 512, 256, 128) if n_dst % c == 0] or [n_dst]
    tk_cands = sorted({c for c in (n_src, 1024, 512, 256, 128) if n_src % c == 0},
                      reverse=True)
    if max_tm is not None:
        tm_cands = [c for c in tm_cands if c <= max_tm] or [min(tm_cands)]
    if max_tk is not None:
        tk_cands = [c for c in tk_cands if c <= max_tk] or [min(tk_cands)]

    def footprint(tm, tk):
        return (tm * f_in * 4                           # f32 accumulator scratch
                + 2 * tm * tk * 2                       # A tile, double-buffered bf16
                + 2 * tk * f_in * 2                     # H tile, double-buffered bf16
                + 2 * tm * 4                            # norm tile, double-buffered f32
                + resident                              # W + b
                + 2 * tm * out_cols * out_itemsize)     # out tile, double-buffered

    for tm in tm_cands:
        for tk in tk_cands:
            if footprint(tm, tk) <= budget:
                return tm, tk, footprint(tm, tk)
    tm, tk = min(tm_cands), min(tk_cands)
    return tm, tk, footprint(tm, tk)


def node_update(a, h, norm, w, b, *, mode, vmem_cap=None, max_tm=None, max_tk=None):
    if vmem_cap is None:
        vmem_cap = _vmem_capacity_bytes()

    a = a.astype(jnp.bfloat16)
    h = h.astype(jnp.bfloat16)
    w = w.astype(jnp.bfloat16)

    n_dst, n_src = a.shape
    f_in = h.shape[1]
    f_out = w.shape[1]
    out_cols = 2 * f_out if mode == "concat" else f_out
    out_dtype = jnp.float32 if mode == "plain" else jnp.bfloat16   # bf16 intermediates
    out_itemsize = jnp.dtype(out_dtype).itemsize

    tm, tk, fp = _select_tiles(n_dst, n_src, f_in, f_out, out_cols, out_itemsize,
                               vmem_cap, max_tm, max_tk)
    grid = (n_dst // tm, n_src // tk)
    vmem_limit = min(int(vmem_cap * 0.85), fp + (16 << 20))

    flops = int(2 * n_dst * n_src * f_in + 2 * n_dst * f_in * f_out)
    bytes_accessed = int(
        2 * n_dst * n_src                    # A (bf16), streamed once
        + 2 * n_src * f_in * grid[0]         # H (bf16), re-streamed per dst-row tile
        + 2 * f_in * f_out + 4 * f_out       # W + b, fetched once
        + 4 * n_dst                          # norm
        + out_itemsize * n_dst * out_cols)   # output

    kernel = functools.partial(_node_update_kernel, mode=mode, f_out=f_out)

    def build(resident_single_buffer):
        res_kw = ({"pipeline_mode": pl.Buffered(1)}    # constant index_map -> one copy
                  if resident_single_buffer else {})
        return pl.pallas_call(
            kernel,
            out_shape=jax.ShapeDtypeStruct((n_dst, out_cols), out_dtype),
            grid_spec=pltpu.PrefetchScalarGridSpec(
                num_scalar_prefetch=0,
                grid=grid,
                in_specs=[
                    pl.BlockSpec((tm, tk), lambda i, k: (i, k)),       # A over (i, k)
                    pl.BlockSpec((tk, f_in), lambda i, k: (k, 0)),     # H over k
                    pl.BlockSpec((tm, 1), lambda i, k: (i, 0)),        # norm per dst tile
                    pl.BlockSpec((f_in, f_out), lambda i, k: (0, 0), **res_kw),  # W
                    pl.BlockSpec((1, f_out), lambda i, k: (0, 0), **res_kw),     # b
                ],
                out_specs=pl.BlockSpec((tm, out_cols), lambda i, k: (i, 0)),
                scratch_shapes=[pltpu.VMEM((tm, f_in), jnp.float32)],  # A@H accumulator
            ),
            compiler_params=pltpu.CompilerParams(
                dimension_semantics=("parallel", "arbitrary"),
                vmem_limit_bytes=vmem_limit,
            ),
            cost_estimate=pl.CostEstimate(flops=flops, transcendentals=0,
                                          bytes_accessed=bytes_accessed),
        )

    try:
        return build(True)(a, h, norm, w, b)
    except Exception:
        # Fallback if single-buffered resident blocks are unsupported in this JAX build.
        return build(False)(a, h, norm, w, b)


# ------------------------------------------------------------------------ preprocessing
def prepare_gcn(features, adjs, norms, weights, biases, n_layers):
    """One-time preprocessing (graph/weight prep, not the hot path): zero-pad node
    counts and feature widths to multiples of 128 (lane-dense stores, MXU-aligned K/N),
    remap the concat layer's weight rows into the padded column layout, and cast the
    MXU operands (features / A / W) to bfloat16."""
    node_counts = [adjs[0].shape[1]] + [a.shape[0] for a in adjs]
    nc_pad = [_round_up(n, LANE) for n in node_counts]

    f_in0 = features.shape[1]
    feat_pad = _pad2(features.astype(jnp.float32), nc_pad[0],
                     _round_up(f_in0, LANE)).astype(jnp.bfloat16)

    layers = []
    # (row offset in original W, column offset in padded input, segment length)
    in_segments = [(0, 0, f_in0)]
    in_pad_width = feat_pad.shape[1]

    for i in range(n_layers + 1):
        if i < n_layers:
            mode = "concat" if i == n_layers - 1 else "act"   # skip_start layer concats
        else:
            mode = "plain"                                     # final classifier

        f_out = weights[i].shape[1]
        f_out_pad = _round_up(f_out, LANE)

        w_pad = jnp.zeros((in_pad_width, f_out_pad), jnp.float32)
        for (w_row, col_off, length) in in_segments:
            w_pad = w_pad.at[col_off:col_off + length, :f_out].set(
                weights[i][w_row:w_row + length, :])
        b_pad = jnp.zeros((1, f_out_pad), jnp.float32).at[:, :f_out].set(biases[i])
        a_pad = _pad2(adjs[i].astype(jnp.float32), nc_pad[i + 1],
                      nc_pad[i]).astype(jnp.bfloat16)
        norm_pad = _pad2(norms[i].astype(jnp.float32), nc_pad[i + 1], 1)

        layers.append(dict(a=a_pad, norm=norm_pad, w=w_pad.astype(jnp.bfloat16),
                           b=b_pad, mode=mode))

        if mode == "concat":
            in_segments = [(0, 0, f_out), (f_out, f_out_pad, f_out)]
            in_pad_width = 2 * f_out_pad
        else:
            in_segments = [(0, 0, f_out)]
            in_pad_width = f_out_pad

    return feat_pad, layers, node_counts


# ----------------------------------------------------------------------------- forward
def gcn_infer(feat_pad, layers, *, fuse=None, max_tm=None, max_tk=None):
    """Mirrors GCNInfer.forward over a NodeFlow with n_layers+1 NodeUpdate layers."""
    vmem_cap = _vmem_capacity_bytes()
    if fuse is None:
        fuse = _fused_footprint_bytes(feat_pad, layers) <= vmem_cap // 2
    if fuse:
        return gcn_infer_fused(feat_pad, layers, vmem_cap)
    h = feat_pad
    for lyr in layers:
        h = node_update(lyr["a"], h, lyr["norm"], lyr["w"], lyr["b"], mode=lyr["mode"],
                        vmem_cap=vmem_cap, max_tm=max_tm, max_tk=max_tk)
    return h


def gcn_infer_ref(features, adjs, norms, weights, biases, n_layers):
    """Pure-JAX reference with the same bf16-at-MXU / f32-accumulate numerics and the
    same operation order (norm applied after the Linear) as the kernels."""
    h = features
    for i in range(n_layers + 1):
        agg = jnp.dot(adjs[i].astype(jnp.bfloat16), h.astype(jnp.bfloat16),
                      preferred_element_type=jnp.float32)
        z = jnp.dot(agg.astype(jnp.bfloat16), weights[i].astype(jnp.bfloat16),
                    preferred_element_type=jnp.float32) * norms[i] + biases[i]
        if i < n_layers:
            if i == n_layers - 1:
                h = jnp.concatenate([z, jnp.maximum(z, 0.0)], axis=1)
            else:
                h = jnp.maximum(z, 0.0)
        else:
            h = z
    return h


# -------------------------------------------------------------------------------- demo
def _make_example(key, node_counts, in_feats, n_hidden, n_classes, n_layers):
    keys = iter(jax.random.split(key, 4 * (n_layers + 1) + 1))
    features = jax.random.normal(next(keys), (node_counts[0], in_feats), jnp.float32)
    feat_dims = [in_feats] + [n_hidden] * (n_layers - 1) + [2 * n_hidden]
    out_dims = [n_hidden] * n_layers + [n_classes]
    adjs, norms, weights, biases = [], [], [], []
    for i in range(n_layers + 1):
        n_dst, n_src = node_counts[i + 1], node_counts[i]
        adjs.append((jax.random.uniform(next(keys), (n_dst, n_src)) < 0.25)
                    .astype(jnp.float32))
        norms.append(jax.random.uniform(next(keys), (n_dst, 1), jnp.float32, 0.1, 1.0))
        weights.append(jax.random.normal(next(keys), (feat_dims[i], out_dims[i]),
                                         jnp.float32) * 0.1)
        biases.append(jax.random.normal(next(keys), (1, out_dims[i]),
                                        jnp.float32) * 0.1)
    return features, adjs, norms, weights, biases


def _check(node_counts, in_feats, n_hidden, n_classes, n_layers, key, **infer_kwargs):
    features, adjs, norms, weights, biases = _make_example(
        key, node_counts, in_feats, n_hidden, n_classes, n_layers)
    feat_pad, layers, ncounts = prepare_gcn(
        features, adjs, norms, weights, biases, n_layers)
    out_pad = jax.block_until_ready(gcn_infer(feat_pad, layers, **infer_kwargs))
    out = out_pad[: ncounts[-1], :n_classes]                 # strip padding
    ref = gcn_infer_ref(features, adjs, norms, weights, biases, n_layers)
    assert out.shape == (node_counts[-1], n_classes), out.shape
    assert jnp.allclose(out, ref, atol=1e-2, rtol=1e-2), "mismatch vs reference"


if __name__ == "__main__":
    in_feats, n_hidden, n_classes, n_layers = 16, 32, 8, 2
    key = jax.random.PRNGKey(0)
    k1, k2 = jax.random.split(key)

    # 1) Small NodeFlow: auto-selects the fully-fused single-pallas_call path
    #    (all 3 NodeUpdate layers in one kernel, intermediates resident in VMEM).
    _check([64, 32, 16, 8], in_feats, n_hidden, n_classes, n_layers, k1)

    # 2) Same NodeFlow, forced through the tiled per-layer path.
    _check([64, 32, 16, 8], in_feats, n_hidden, n_classes, n_layers, k1, fuse=False)

    # 3) Larger NodeFlow with tiles capped at 128 so the (dst-tile, src-reduction) grid,
    #    K accumulation, and concat slice-store epilogue are all exercised.
    _check([384, 256, 128, 64], in_feats, n_hidden, n_classes, n_layers, k2,
           fuse=False, max_tm=128, max_tk=128)

    print("KERNEL_OK")
</pallas_src>

<mosaic_0001>
module attributes {stable_mosaic.version = 11 : i64} {
  func.func @kernel(%arg0: memref<128x128xbf16, #tpu.memory_space<vmem>>, %arg1: memref<128x128xbf16, #tpu.memory_space<vmem>>, %arg2: memref<128x1xf32, #tpu.memory_space<vmem>>, %arg3: memref<128x128xbf16, #tpu.memory_space<vmem>>, %arg4: memref<1x128xf32, #tpu.memory_space<vmem>>, %arg5: memref<128x128xbf16, #tpu.memory_space<vmem>>, %arg6: memref<128x1xf32, #tpu.memory_space<vmem>>, %arg7: memref<128x128xbf16, #tpu.memory_space<vmem>>, %arg8: memref<1x128xf32, #tpu.memory_space<vmem>>, %arg9: memref<128x128xbf16, #tpu.memory_space<vmem>>, %arg10: memref<128x1xf32, #tpu.memory_space<vmem>>, %arg11: memref<256x128xbf16, #tpu.memory_space<vmem>>, %arg12: memref<1x128xf32, #tpu.memory_space<vmem>>, %arg13: memref<128x128xf32, #tpu.memory_space<vmem>>) attributes {dimension_semantics = [], scalar_prefetch = 0 : i64, scratch_operands = 0 : i64, tpu.core_type = #tpu.core_type<tc>} {
    %c0 = arith.constant 0 : index
    %c0_0 = arith.constant 0 : index
    %0 = vector.load %arg0[%c0, %c0_0] : memref<128x128xbf16, #tpu.memory_space<vmem>>, vector<128x128xbf16>
    %c0_1 = arith.constant 0 : index
    %c0_2 = arith.constant 0 : index
    %1 = vector.load %arg1[%c0_1, %c0_2] : memref<128x128xbf16, #tpu.memory_space<vmem>>, vector<128x128xbf16>
    %cst = arith.constant dense<0.000000e+00> : vector<128x128xf32>
    %2 = tpu.matmul %1, %0, %cst {dimension_numbers = #tpu.dot_dimension_numbers<[1], [0], [0], [1], [0, 0, 1, 1], [], []>} : vector<128x128xbf16>, vector<128x128xbf16>, vector<128x128xf32> -> vector<128x128xf32>
    %3 = arith.truncf %2 : vector<128x128xf32> to vector<128x128xbf16>
    %c0_3 = arith.constant 0 : index
    %c0_4 = arith.constant 0 : index
    %4 = vector.load %arg3[%c0_3, %c0_4] : memref<128x128xbf16, #tpu.memory_space<vmem>>, vector<128x128xbf16>
    %cst_5 = arith.constant dense<0.000000e+00> : vector<128x128xf32>
    %5 = tpu.matmul %3, %4, %cst_5 {dimension_numbers = #tpu.dot_dimension_numbers<[1], [0], [0], [1], [0, 0, 1, 1], [], []>} : vector<128x128xbf16>, vector<128x128xbf16>, vector<128x128xf32> -> vector<128x128xf32>
    %c0_6 = arith.constant 0 : index
    %c0_7 = arith.constant 0 : index
    %6 = vector.load %arg2[%c0_6, %c0_7] : memref<128x1xf32, #tpu.memory_space<vmem>>, vector<128x1xf32>
    %7 = vector.broadcast %6 : vector<128x1xf32> to vector<128x128xf32>
    %8 = arith.mulf %5, %7 : vector<128x128xf32>
    %c0_8 = arith.constant 0 : index
    %c0_9 = arith.constant 0 : index
    %9 = vector.load %arg4[%c0_8, %c0_9] : memref<1x128xf32, #tpu.memory_space<vmem>>, vector<1x128xf32>
    %10 = vector.broadcast %9 : vector<1x128xf32> to vector<128x128xf32>
    %11 = arith.addf %8, %10 : vector<128x128xf32>
    %cst_10 = arith.constant 0.000000e+00 : f32
    %12 = vector.broadcast %cst_10 : f32 to vector<128x128xf32>
    %13 = arith.maximumf %11, %12 : vector<128x128xf32>
    %14 = arith.truncf %13 : vector<128x128xf32> to vector<128x128xbf16>
    %c0_11 = arith.constant 0 : index
    %c0_12 = arith.constant 0 : index
    %15 = vector.load %arg5[%c0_11, %c0_12] : memref<128x128xbf16, #tpu.memory_space<vmem>>, vector<128x128xbf16>
    %cst_13 = arith.constant dense<0.000000e+00> : vector<128x128xf32>
    %16 = tpu.matmul %15, %14, %cst_13 {dimension_numbers = #tpu.dot_dimension_numbers<[1], [0], [0], [1], [0, 0, 1, 1], [], []>} : vector<128x128xbf16>, vector<128x128xbf16>, vector<128x128xf32> -> vector<128x128xf32>
    %17 = arith.truncf %16 : vector<128x128xf32> to vector<128x128xbf16>
    %c0_14 = arith.constant 0 : index
    %c0_15 = arith.constant 0 : index
    %18 = vector.load %arg7[%c0_14, %c0_15] : memref<128x128xbf16, #tpu.memory_space<vmem>>, vector<128x128xbf16>
    %cst_16 = arith.constant dense<0.000000e+00> : vector<128x128xf32>
    %19 = tpu.matmul %17, %18, %cst_16 {dimension_numbers = #tpu.dot_dimension_numbers<[1], [0], [0], [1], [0, 0, 1, 1], [], []>} : vector<128x128xbf16>, vector<128x128xbf16>, vector<128x128xf32> -> vector<128x128xf32>
    %c0_17 = arith.constant 0 : index
    %c0_18 = arith.constant 0 : index
    %20 = vector.load %arg6[%c0_17, %c0_18] : memref<128x1xf32, #tpu.memory_space<vmem>>, vector<128x1xf32>
    %21 = vector.broadcast %20 : vector<128x1xf32> to vector<128x128xf32>
    %22 = arith.mulf %19, %21 : vector<128x128xf32>
    %c0_19 = arith.constant 0 : index
    %c0_20 = arith.constant 0 : index
    %23 = vector.load %arg8[%c0_19, %c0_20] : memref<1x128xf32, #tpu.memory_space<vmem>>, vector<1x128xf32>
    %24 = vector.broadcast %23 : vector<1x128xf32> to vector<128x128xf32>
    %25 = arith.addf %22, %24 : vector<128x128xf32>
    %cst_21 = arith.constant 0.000000e+00 : f32
    %26 = vector.broadcast %cst_21 : f32 to vector<128x128xf32>
    %27 = arith.maximumf %25, %26 : vector<128x128xf32>
    %28 = tpu.concatenate %25, %27 in 1 : vector<128x128xf32>, vector<128x128xf32> -> vector<128x256xf32>
    %29 = arith.truncf %28 : vector<128x256xf32> to vector<128x256xbf16>
    %c0_22 = arith.constant 0 : index
    %c0_23 = arith.constant 0 : index
    %30 = vector.load %arg9[%c0_22, %c0_23] : memref<128x128xbf16, #tpu.memory_space<vmem>>, vector<128x128xbf16>
    %cst_24 = arith.constant dense<0.000000e+00> : vector<128x256xf32>
    %31 = tpu.matmul %30, %29, %cst_24 {dimension_numbers = #tpu.dot_dimension_numbers<[1], [0], [0], [1], [0, 0, 1, 1], [], []>} : vector<128x128xbf16>, vector<128x256xbf16>, vector<128x256xf32> -> vector<128x256xf32>
    %32 = arith.truncf %31 : vector<128x256xf32> to vector<128x256xbf16>
    %c0_25 = arith.constant 0 : index
    %c0_26 = arith.constant 0 : index
    %33 = vector.load %arg11[%c0_25, %c0_26] : memref<256x128xbf16, #tpu.memory_space<vmem>>, vector<256x128xbf16>
    %cst_27 = arith.constant dense<0.000000e+00> : vector<128x128xf32>
    %34 = tpu.matmul %32, %33, %cst_27 {dimension_numbers = #tpu.dot_dimension_numbers<[1], [0], [0], [1], [0, 0, 1, 1], [], []>} : vector<128x256xbf16>, vector<256x128xbf16>, vector<128x128xf32> -> vector<128x128xf32>
    %c0_28 = arith.constant 0 : index
    %c0_29 = arith.constant 0 : index
    %35 = vector.load %arg10[%c0_28, %c0_29] : memref<128x1xf32, #tpu.memory_space<vmem>>, vector<128x1xf32>
    %36 = vector.broadcast %35 : vector<128x1xf32> to vector<128x128xf32>
    %37 = arith.mulf %34, %36 : vector<128x128xf32>
    %c0_30 = arith.constant 0 : index
    %c0_31 = arith.constant 0 : index
    %38 = vector.load %arg12[%c0_30, %c0_31] : memref<1x128xf32, #tpu.memory_space<vmem>>, vector<1x128xf32>
    %39 = vector.broadcast %38 : vector<1x128xf32> to vector<128x128xf32>
    %40 = arith.addf %37, %39 : vector<128x128xf32>
    %c0_32 = arith.constant 0 : index
    %c0_33 = arith.constant 0 : index
    %41 = vector.load %arg13[%c0_32, %c0_33] : memref<128x128xf32, #tpu.memory_space<vmem>>, vector<128x128xf32>
    tpu.vector_store %arg13[%c0_32, %c0_33], %40 {strides = array<i32>} : memref<128x128xf32, #tpu.memory_space<vmem>>, vector<128x128xf32>,
    return
  }
}

</mosaic_0001>

<bundles_post_ra>
// kernel: tpu_custom_call.1
= control target key start
LH: loop header
LB: loop body
LE: loop exit
PB: predicated region body
PF: predicated region fallthrough
CT: control target
= control target key end

     0   :  { %18 = vsyncpa [#allocation3], 0  ;;  %s2378_s0 = inlined_call_operand.vmem [shape: bf16[128,128], index: 0, kind: input, shape index: {}]   ;;  %s2379_s1 = inlined_call_operand.vmem [shape: bf16[128,128], index: 1, kind: input, shape index: {}]   ;;  %s2380_s2 = inlined_call_operand.vmem [shape: f32[128,1], index: 2, kind: input, shape index: {}]   ;;  %s2381_s3 = inlined_call_operand.vmem [shape: bf16[128,128], index: 3, kind: input, shape index: {}]   ;;  %s2382_s4 = inlined_call_operand.vmem [shape: f32[1,128], index: 4, kind: input, shape index: {}]   ;;  %s2383_s5 = inlined_call_operand.vmem [shape: bf16[128,128], index: 5, kind: input, shape index: {}]   ;;  %s2384_s6 = inlined_call_operand.vmem [shape: f32[128,1], index: 6, kind: input, shape index: {}]   ;;  %s2385_s7 = inlined_call_operand.hbm [shape: bf16[128,128], index: 7, kind: input, shape index: {}]   ;;  %s2386_s8 = inlined_call_operand.vmem [shape: f32[1,128], index: 8, kind: input, shape index: {}]   ;;  %s2387_s9 = inlined_call_operand.hbm [shape: bf16[128,128], index: 9, kind: input, shape index: {}]   ;;  %s2388_s10 = inlined_call_operand.vmem [shape: f32[128,1], index: 10, kind: input, shape index: {}]   ;;  %s2389_s11 = inlined_call_operand.vmem [shape: bf16[256,128], index: 11, kind: input, shape index: {}]   ;;  %s2390_s12 = inlined_call_operand.vmem [shape: f32[1,128], index: 12, kind: input, shape index: {}]   ;;  %s2391_s13 = inlined_call_operand.hbm [shape: f32[128,128], index: 13, kind: output, shape index: {}]  }
   0x1   :  { %19 = vsyncpa [#allocation6], 0 }
   0x2   :  { %20 = vsyncpa [#allocation4], 0  ;;  %s39_s27 = sshll.u32 %s2385_s7, 4  ;;  %s1913_s28 = smov [#allocation2]   ;;  %s40_s27 = int_to_ptr.hbm [resolvable:$true] %s39_s27 }
   0x3   :  { %s41_s29 = sshll.u32 %s1913_s28, 4  ;;  %s54_s15 = sshll.u32 %s2387_s9, 4  ;;  %s42_s29 = int_to_ptr.vmem [resolvable:$true] %s41_s29  ;;  %s55_s15 = int_to_ptr.hbm [resolvable:$true] %s54_s15 }
   0x4   :  { %s1914_s16 = smov 64   ;;  %s1915_s17 = smov 4  }
   0x5   :  { %47 = dma.hbm_to_vmem [thread:$0]  %s40_s27, 1024, %s42_s29, [#allocation3], %s1914_s16, %s1914_s16, %s1915_s17  }
   0x6   :  { %s1916_s18 = smov [#allocation5]  }
   0x7   :  { %s56_s19 = sshll.u32 %s1916_s18, 4  ;;  %s57_s19 = int_to_ptr.vmem [resolvable:$true] %s56_s19 }
   0x8   :  { %62 = dma.hbm_to_vmem [thread:$0]  %s55_s15, 1024, %s57_s19, [#allocation6], %s1914_s16, %s1914_s16, %s1915_s17  }
   0x9   :  { %1907 = dma.done.wait [#allocation3], 1024  }
   0xa   :  { %1908 = vsyncadd [#allocation3], 4294966272 }
   0xb   :  { %1909 = dma.done.wait [#allocation6], 1024  }
   0xc   :  { %1910 = vsyncadd [#allocation6], 4294966272  ;;  %v1764_v0 = vld [vmem:[%s2378_s0 + $0x38] sm:$0xff]  ;;  %v1763_v1 = vld [vmem:[%s2378_s0 + $0x30] sm:$0xff]  ;;  %v1917_v18 = vmov 0   ;;  %s1919_s30 = smov 128  }
   0xd   :  { %205 = vmatpush.bf16.msra.mxu0 %v1764_v0  ;;  %v1762_v2 = vld [vmem:[%s2378_s0 + $0x28] sm:$0xff]  ;;  %v1761_v3 = vld [vmem:[%s2378_s0 + $0x20] sm:$0xff]  ;;  %v1760_v4 = vld [vmem:[%s2378_s0 + $0x18] sm:$0xff]  ;;  %1829 = vset.pattern.permute.xlu0 %v1917_v18 }
   0xe   :  { %v1759_v5 = vld [vmem:[%s2378_s0 + $0x10] sm:$0xff]  ;;  %v1758_v6 = vld [vmem:[%s2378_s0 + $0x8] sm:$0xff]  ;;  %v1757_v7 = vld [vmem:[%s2378_s0] sm:$0xff]  ;;  %1831 = vset.pattern.permute.xlu2 %v1917_v18  ;;  %1830 = vset.pattern.permute.xlu1 %v1917_v18 }
   0xf   :  { %v1765_v8 = vld [vmem:[%s2379_s1] sm:$0xff]  ;;  %v1766_v9 = vld [vmem:[%s2379_s1 + $0x8] sm:$0xff]  ;;  %v1767_v10 = vld [vmem:[%s2379_s1 + $0x10] sm:$0xff] }
  0x10   :  { %v1768_v11 = vld [vmem:[%s2379_s1 + $0x18] sm:$0xff]  ;;  %v1769_v12 = vld [vmem:[%s2379_s1 + $0x20] sm:$0xff]  ;;  %v1779_v14 = vld [vmem:[%s2381_s3 + $0x30] sm:$0xff] }
  0x11   :  { %206 = vmatpush.bf16.msra.mxu0 %v1763_v1  ;;  %v1780_v13 = vld [vmem:[%s2381_s3 + $0x38] sm:$0xff]  ;;  %v1770_v15 = vld [vmem:[%s2379_s1 + $0x28] sm:$0xff]  ;;  %v389_v17 = vld [vmem:[%s2380_s2 + $0x70] sm:$0xff] }
  0x12   :  { %326 = vmatpush.bf16.msra.mxu1 %v1780_v13  ;;  %v1778_v16 = vld [vmem:[%s2381_s3 + $0x28] sm:$0xff]  ;;  %v1777_v19 = vld [vmem:[%s2381_s3 + $0x20] sm:$0xff]  ;;  %463 = vperm.xlu0 %1829, %v389_v17   ;;  %v1776_v20 = vld [vmem:[%s2381_s3 + $0x18] sm:$0xff] }
  0x13   :  { %v390_v21 = vld [vmem:[%s2380_s2 + $0x78] sm:$0xff]  ;;  %v1775_v22 = vld [vmem:[%s2381_s3 + $0x10] sm:$0xff]  ;;  %v1774_v24 = vld [vmem:[%s2381_s3 + $0x8] sm:$0xff] }
  0x14   :  { %v1771_v23 = vld [vmem:[%s2379_s1 + $0x30] sm:$0xff]  ;;  %v383_v25 = vld [vmem:[%s2380_s2 + $0x40] sm:$0xff]  ;;  %v382_v29 = vld [vmem:[%s2380_s2 + $0x38] sm:$0xff] }
  0x15   :  { %207 = vmatpush.bf16.msra.mxu0 %v1762_v2  ;;  %v1773_v26 = vld [vmem:[%s2381_s3] sm:$0xff]  ;;  %v385_v28 = vld [vmem:[%s2380_s2 + $0x50] sm:$0xff]  ;;  %v1772_v30 = vld [vmem:[%s2379_s1 + $0x38] sm:$0xff] }
  0x16   :  { %327 = vmatpush.bf16.msra.mxu1 %v1779_v14  ;;  %v387_v27 = vld [vmem:[%s2380_s2 + $0x60] sm:$0xff]  ;;  %443 = vperm.xlu2 %1831, %v385_v28   ;;  %v388_v31 = vld [vmem:[%s2380_s2 + $0x68] sm:$0xff]  ;;  %v386_v32 = vld [vmem:[%s2380_s2 + $0x58] sm:$0xff] }
  0x17   :  { %453 = vperm.xlu1 %1830, %v387_v27   ;;  %v377_v33 = vld [vmem:[%s2380_s2 + $0x10] sm:$0xff]  ;;  %v384_v34 = vld [vmem:[%s2380_s2 + $0x48] sm:$0xff]  ;;  %v379_v39 = vld [vmem:[%s2380_s2 + $0x20] sm:$0xff] }
  0x18   :  { %v381_v35 = vld [vmem:[%s2380_s2 + $0x30] sm:$0xff]  ;;  %v376_v36 = vld [vmem:[%s2380_s2 + $0x8] sm:$0xff]  ;;  %v378_v42 = vld [vmem:[%s2380_s2 + $0x18] sm:$0xff] }
  0x19   :  { %208 = vmatpush.bf16.msra.mxu0 %v1761_v3  ;;  %v380_v38 = vld [vmem:[%s2380_s2 + $0x28] sm:$0xff]  ;;  %v375_v43 = vld [vmem:[%s2380_s2] sm:$0xff]  ;;  %v779_v45 = vld [vmem:[%s2384_s6 + $0x70] sm:$0xff] }
  0x1a   :  { %328 = vmatpush.bf16.msra.mxu1 %v1778_v16  ;;  %468 = vperm.xlu0 %1829, %v390_v21   ;;  %v777_v47 = vld [vmem:[%s2384_s6 + $0x60] sm:$0xff]  ;;  %v778_v49 = vld [vmem:[%s2384_s6 + $0x68] sm:$0xff]  ;;  %v776_v51 = vld [vmem:[%s2384_s6 + $0x58] sm:$0xff] }
  0x1b   :  { %v773_v52 = vld [vmem:[%s2384_s6 + $0x40] sm:$0xff]  ;;  %v771_v55 = vld [vmem:[%s2384_s6 + $0x30] sm:$0xff]  ;;  %v772_v56 = vld [vmem:[%s2384_s6 + $0x38] sm:$0xff] }
  0x1c   :  { %v770_v58 = vld [vmem:[%s2384_s6 + $0x28] sm:$0xff]  ;;  %v780_v59 = vld [vmem:[%s2384_s6 + $0x78] sm:$0xff]  ;;  %v767_v60 = vld [vmem:[%s2384_s6 + $0x10] sm:$0xff] }
  0x1d   :  { %209 = vmatpush.bf16.msra.mxu0 %v1760_v4  ;;  %v765_v63 = vld [vmem:[%s2384_s6] sm:$0xff]  ;;  %v775_v0 = vld [vmem:[%s2384_s6 + $0x50] sm:$0xff]  ;;  %v766_v1 = vld [vmem:[%s2384_s6 + $0x8] sm:$0xff] }
  0x1e   :  { %329 = vmatpush.bf16.msra.mxu1 %v1777_v19  ;;  %448 = vperm.xlu2 %1831, %v386_v32   ;;  %v1334_v3 = vld [vmem:[%s2388_s10 + $0x8] sm:$0xff]  ;;  %v768_v13 = vld [vmem:[%s2384_s6 + $0x18] sm:$0xff]  ;;  %v1341_v14 = vld [vmem:[%s2388_s10 + $0x40] sm:$0xff] }
  0x1f   :  { %458 = vperm.xlu1 %1830, %v388_v31   ;;  %v774_v4 = vld [vmem:[%s2384_s6 + $0x48] sm:$0xff]  ;;  %v1343_v17 = vld [vmem:[%s2388_s10 + $0x50] sm:$0xff]  ;;  %v1333_v18 = vld [vmem:[%s2388_s10] sm:$0xff] }
  0x20   :  { %v1344_v19 = vld [vmem:[%s2388_s10 + $0x58] sm:$0xff]  ;;  %v1342_v28 = vld [vmem:[%s2388_s10 + $0x48] sm:$0xff]  ;;  %v1345_v31 = vld [vmem:[%s2388_s10 + $0x60] sm:$0xff] }
  0x21   :  { %210 = vmatpush.bf16.msra.mxu0 %v1759_v5  ;;  %v1335_v5 = vld [vmem:[%s2388_s10 + $0x10] sm:$0xff]  ;;  %v1336_v21 = vld [vmem:[%s2388_s10 + $0x18] sm:$0xff] }
  0x22   :  { %330 = vmatpush.bf16.msra.mxu1 %v1776_v20  ;;  %433 = vperm.xlu0 %1829, %v383_v25   ;;  %v1346_v20 = vld [vmem:[%s2388_s10 + $0x68] sm:$0xff]  ;;  %v1348_v32 = vld [vmem:[%s2388_s10 + $0x78] sm:$0xff] }
  0x25   :  { %211 = vmatpush.bf16.msra.mxu0 %v1758_v6 }
  0x26   :  { %331 = vmatpush.bf16.msra.mxu1 %v1775_v22  ;;  %423 = vperm.xlu2 %1831, %v381_v35  }
  0x27   :  { %438 = vperm.xlu1 %1830, %v384_v34  }
  0x29   :  { %212 = vmatpush.bf16.msra.mxu0 %v1757_v7 }
  0x2a   :  { %332 = vmatpush.bf16.msra.mxu1 %v1774_v24  ;;  %428 = vperm.xlu0 %1829, %v382_v29  }
  0x2c   :  { %213 = vmatmul.bf16.vlgmr.msra.gmra.mxu0 %v1765_v8  ;;  %v1337_v8 = vld [vmem:[%s2388_s10 + $0x20] sm:$0xff] }
  0x2e   :  { %333 = vmatpush.bf16.msra.mxu1 %v1773_v26  ;;  %418 = vperm.xlu2 %1831, %v380_v38   ;;  %v1339_v26 = vld [vmem:[%s2388_s10 + $0x30] sm:$0xff] }
  0x2f   :  { %413 = vperm.xlu1 %1830, %v379_v39  }
  0x32   :  { %403 = vperm.xlu0 %1829, %v377_v33  }
  0x36   :  { %393 = vperm.xlu2 %1831, %v375_v43  }
  0x37   :  { %408 = vperm.xlu1 %1830, %v378_v42  }
  0x3a   :  { %398 = vperm.xlu0 %1829, %v376_v36  }
  0x3c   :  { %218 = vmatmul.bf16.gmra.mxu0 %v1766_v9  ;;  %v769_v9 = vld [vmem:[%s2384_s6 + $0x20] sm:$0xff] }
  0x3e   :  { %858 = vperm.xlu2 %1831, %v780_v59  }
  0x3f   :  { %853 = vperm.xlu1 %1830, %v779_v45  }
  0x42   :  { %843 = vperm.xlu0 %1829, %v777_v47  }
  0x46   :  { %833 = vperm.xlu2 %1831, %v775_v0  }
  0x47   :  { %848 = vperm.xlu1 %1830, %v778_v49  }
  0x4a   :  { %838 = vperm.xlu0 %1829, %v776_v51  }
  0x4c   :  { %223 = vmatmul.bf16.gmra.mxu0 %v1767_v10  ;;  %v1338_v10 = vld [vmem:[%s2388_s10 + $0x28] sm:$0xff] }
  0x4e   :  { %828 = vperm.xlu2 %1831, %v774_v4  }
  0x4f   :  { %823 = vperm.xlu1 %1830, %v773_v52  }
  0x52   :  { %813 = vperm.xlu0 %1829, %v771_v55  }
  0x56   :  { %803 = vperm.xlu2 %1831, %v769_v9  }
  0x57   :  { %818 = vperm.xlu1 %1830, %v772_v56  }
  0x5a   :  { %808 = vperm.xlu0 %1829, %v770_v58  }
  0x5c   :  { %228 = vmatmul.bf16.gmra.mxu0 %v1768_v11 }
  0x5e   :  { %798 = vperm.xlu2 %1831, %v768_v13  }
  0x5f   :  { %793 = vperm.xlu1 %1830, %v767_v60  }
  0x62   :  { %783 = vperm.xlu0 %1829, %v765_v63  }
  0x66   :  { %1351 = vperm.xlu2 %1831, %v1333_v18  }
  0x67   :  { %788 = vperm.xlu1 %1830, %v766_v1  }
  0x6a   :  { %1356 = vperm.xlu0 %1829, %v1334_v3  }
  0x6c   :  { %233 = vmatmul.bf16.gmra.mxu0 %v1769_v12  ;;  %v1340_v12 = vld [vmem:[%s2388_s10 + $0x38] sm:$0xff] }
  0x6e   :  { %1366 = vperm.xlu2 %1831, %v1336_v21  }
  0x6f   :  { %1361 = vperm.xlu1 %1830, %v1335_v5  }
  0x70   :  { %v444_v49 = vpop.permute.xlu2 %443 }
  0x72   :  { %1371 = vperm.xlu0 %1829, %v1337_v8  }
  0x76   :  { %1381 = vperm.xlu2 %1831, %v1339_v26  }
  0x77   :  { %1376 = vperm.xlu1 %1830, %v1338_v10  }
  0x7a   :  { %1386 = vperm.xlu0 %1829, %v1340_v12  }
  0x7c   :  { %238 = vmatmul.bf16.gmra.mxu0 %v1770_v15 }
  0x7e   :  { %1396 = vperm.xlu2 %1831, %v1342_v28  }
  0x7f   :  { %1391 = vperm.xlu1 %1830, %v1341_v14  }
  0x82   :  { %1401 = vperm.xlu0 %1829, %v1343_v17  }
  0x84   :  { %v464_v45 = vpop.permute.xlu0 %463 }
  0x86   :  { %1411 = vperm.xlu2 %1831, %v1345_v31  }
  0x87   :  { %1406 = vperm.xlu1 %1830, %v1344_v19  }
  0x8a   :  { %1416 = vperm.xlu0 %1829, %v1346_v20  }
  0x8c   :  { %243 = vmatmul.bf16.gmra.mxu0 %v1771_v23  ;;  %v1347_v23 = vld [vmem:[%s2388_s10 + $0x70] sm:$0xff]  ;;  %s1487_s10 = sshll.u32 %s2391_s13, 4  ;;  %s1488_s10 = int_to_ptr.hbm [resolvable:$true] %s1487_s10 }
  0x8e   :  { %1426 = vperm.xlu2 %1831, %v1348_v32  }
  0x8f   :  { %1421 = vperm.xlu1 %1830, %v1347_v23  }
  0x9c   :  { %248 = vmatmul.bf16.gmra.mxu0 %v1772_v30 }
  0xa9   :  { %v214_v37 = vpop.f32.mrf.mxu0 }
  0xb1   :  { %v216_v40 = vpop.f32.mrf.mxu0 }
  0xb2   :  { %v254_v41 = vpack.c.bf16 %v216_v40, %v214_v37 }
  0xb4   :  { %334 = vmatmul.bf16.vlgmr.msra.gmra.mxu1 %v254_v41 }
  0xb9   :  { %v219_v44 = vpop.f32.mrf.mxu0 }
  0xc1   :  { %v221_v46 = vpop.f32.mrf.mxu0 }
  0xc2   :  { %v255_v48 = vpack.c.bf16 %v221_v46, %v219_v44  ;;  %v454_v46 = vpop.permute.xlu1 %453 }
  0xc4   :  { %339 = vmatmul.bf16.gmra.mxu1 %v255_v48  ;;  %v469_v48 = vpop.permute.xlu0 %468 }
  0xc9   :  { %v224_v50 = vpop.f32.mrf.mxu0 }
  0xca   :  { %v459_v51 = vpop.permute.xlu1 %458 }
  0xcc   :  { %v434_v52 = vpop.permute.xlu0 %433 }
  0xd1   :  { %v226_v53 = vpop.f32.mrf.mxu0 }
  0xd2   :  { %v256_v54 = vpack.c.bf16 %v226_v53, %v224_v50  ;;  %v449_v53 = vpop.permute.xlu2 %448  ;;  %v439_v55 = vpop.permute.xlu1 %438 }
  0xd4   :  { %344 = vmatmul.bf16.gmra.mxu1 %v256_v54  ;;  %v429_v59 = vpop.permute.xlu0 %428 }
  0xd9   :  { %v229_v57 = vpop.f32.mrf.mxu0 }
  0xda   :  { %v424_v0 = vpop.permute.xlu2 %423  ;;  %v414_v8 = vpop.permute.xlu1 %413 }
  0xe1   :  { %v231_v61 = vpop.f32.mrf.mxu0 }
  0xe2   :  { %v257_v62 = vpack.c.bf16 %v231_v61, %v229_v57  ;;  %v2224_v57 = vld [vmem:[%s2382_s4] ss:$0 sm:$0xff]  ;;  %v419_v21 = vpop.permute.xlu2 %418  ;;  %s1920_s4 = smov 8  }
  0xe4   :  { %349 = vmatmul.bf16.gmra.mxu1 %v257_v62 }
  0xe9   :  { %v234_v2 = vpop.f32.mrf.mxu0 }
  0xf1   :  { %v236_v6 = vpop.f32.mrf.mxu0 }
  0xf2   :  { %v258_v7 = vpack.c.bf16 %v236_v6, %v234_v2 }
  0xf4   :  { %354 = vmatmul.bf16.gmra.mxu1 %v258_v7 }
  0xf9   :  { %v239_v11 = vpop.f32.mrf.mxu0 }
 0x101   :  { %v241_v15 = vpop.f32.mrf.mxu0 }
 0x102   :  { %v259_v16 = vpack.c.bf16 %v241_v15, %v239_v11 }
 0x104   :  { %359 = vmatmul.bf16.gmra.mxu1 %v259_v16  ;;  %v404_v16 = vpop.permute.xlu0 %403 }
 0x109   :  { %v244_v22 = vpop.f32.mrf.mxu0 }
 0x111   :  { %v246_v24 = vpop.f32.mrf.mxu0 }
 0x112   :  { %v260_v25 = vpack.c.bf16 %v246_v24, %v244_v22 }
 0x114   :  { %364 = vmatmul.bf16.gmra.mxu1 %v260_v25 }
 0x119   :  { %v249_v27 = vpop.f32.mrf.mxu0 }
 0x121   :  { %v251_v29 = vpop.f32.mrf.mxu0 }
 0x122   :  { %v261_v30 = vpack.c.bf16 %v251_v29, %v249_v27  ;;  %v409_v29 = vpop.permute.xlu1 %408 }
 0x124   :  { %369 = vmatmul.bf16.gmra.mxu1 %v261_v30 }
 0x131   :  { %v2213_v33 = vpop.f32.mrf.mxu1 }
 0x139   :  { %v2215_v34 = vpop.f32.mrf.mxu1 }
 0x141   :  { %v2217_v35 = vpop.f32.mrf.mxu1 }
 0x149   :  { %v2219_v36 = vpop.f32.mrf.mxu1 }
 0x151   :  { %v345_v37 = vpop.f32.mrf.mxu1 }
 0x152   :  { %v475_v30 = vmul.f32 %v414_v8, %v345_v37  ;;  %v1789_v8 = vld [vmem:[#allocation2] sm:$0xff] }
 0x159   :  { %v347_v38 = vpop.f32.mrf.mxu1 }
 0x15a   :  { %v476_v25 = vmul.f32 %v419_v21, %v347_v38  ;;  %v495_v38 = vadd.f32 %v2224_v57, %v475_v30 }
 0x161   :  { %v350_v39 = vpop.f32.mrf.mxu1 }
 0x162   :  { %v477_v22 = vmul.f32 %v424_v0, %v350_v39  ;;  %v1786_v0 = vld [vmem:[%s2383_s5 + $0x28] sm:$0xff] }
 0x164   :  { %v497_v31 = vadd.f32 %v2224_v57, %v477_v22 }
 0x169   :  { %v352_v40 = vpop.f32.mrf.mxu1 }
 0x16a   :  { %v478_v17 = vmul.f32 %v429_v59, %v352_v40  ;;  %v474_v40 = vmul.f32 %v409_v29, %v2219_v36 }
 0x16c   :  { %v498_v26 = vadd.f32 %v2224_v57, %v478_v17 }
 0x171   :  { %v355_v41 = vpop.f32.mrf.mxu1 }
 0x172   :  { %v479_v13 = vmul.f32 %v434_v52, %v355_v41  ;;  %v496_v41 = vadd.f32 %v2224_v57, %v476_v25 }
 0x174   :  { %v499_v23 = vadd.f32 %v2224_v57, %v479_v13 }
 0x176   :  { %v515_v32 = vmax.f32 %v499_v23, 0.0 }
 0x179   :  { %v357_v42 = vpop.f32.mrf.mxu1 }
 0x17a   :  { %v480_v9 = vmul.f32 %v439_v55, %v357_v42  ;;  %v514_v42 = vmax.f32 %v498_v26, 0.0 }
 0x17c   :  { %v500_v18 = vadd.f32 %v2224_v57, %v480_v9  ;;  %v1788_v9 = vld [vmem:[%s2383_s5 + $0x38] sm:$0xff] }
 0x17e   :  { %v516_v27 = vmax.f32 %v500_v18, 0.0 }
 0x180   :  { %v527_v39 = vpack.c.bf16 %v516_v27, %v515_v32 }
 0x181   :  { %v360_v43 = vpop.f32.mrf.mxu1 }
 0x182   :  { %v481_v4 = vmul.f32 %v444_v49, %v360_v43  ;;  %v399_v43 = vpop.permute.xlu0 %398  ;;  %v512_v49 = vmax.f32 %v496_v41, 0.0 }
 0x183   :  { %v472_v37 = vmul.f32 %v399_v43, %v2215_v34 }
 0x184   :  { %v501_v14 = vadd.f32 %v2224_v57, %v481_v4  ;;  %v1792_v4 = vld [vmem:[#allocation2 + $0x18] sm:$0xff] }
 0x185   :  { %v492_v52 = vadd.f32 %v2224_v57, %v472_v37 }
 0x186   :  { %v517_v24 = vmax.f32 %v501_v14, 0.0 }
 0x187   :  { %v508_v34 = vmax.f32 %v492_v52, 0.0 }
 0x189   :  { %v362_v44 = vpop.f32.mrf.mxu1 }
 0x18a   :  { %v482_v1 = vmul.f32 %v449_v53, %v362_v44  ;;  %v473_v44 = vmul.f32 %v404_v16, %v2217_v35 }
 0x18c   :  { %v502_v10 = vadd.f32 %v2224_v57, %v482_v1  ;;  %v1795_v1 = vld [vmem:[#allocation2 + $0x30] sm:$0xff] }
 0x18e   :  { %v518_v19 = vmax.f32 %v502_v10, 0.0 }
 0x190   :  { %v528_v28 = vpack.c.bf16 %v518_v19, %v517_v24 }
 0x191   :  { %v365_v47 = vpop.f32.mrf.mxu1 }
 0x192   :  { %v483_v61 = vmul.f32 %v454_v46, %v365_v47  ;;  %v394_v46 = vpop.permute.xlu2 %393  ;;  %v494_v47 = vadd.f32 %v2224_v57, %v474_v40 }
 0x193   :  { %v471_v36 = vmul.f32 %v394_v46, %v2213_v33  ;;  %v1781_v33 = vld [vmem:[%s2383_s5] sm:$0xff] }
 0x194   :  { %v503_v5 = vadd.f32 %v2224_v57, %v483_v61  ;;  %v510_v53 = vmax.f32 %v494_v47, 0.0  ;;  %v1784_v61 = vld [vmem:[%s2383_s5 + $0x18] sm:$0xff] }
 0x196   :  { %v519_v15 = vmax.f32 %v503_v5, 0.0  ;;  %v1787_v5 = vld [vmem:[%s2383_s5 + $0x30] sm:$0xff] }
 0x199   :  { %v367_v50 = vpop.f32.mrf.mxu1 }
 0x19a   :  { %v484_v58 = vmul.f32 %v459_v51, %v367_v50  ;;  %v493_v50 = vadd.f32 %v2224_v57, %v473_v44  ;;  %v511_v51 = vmax.f32 %v495_v38, 0.0 }
 0x19c   :  { %v504_v2 = vadd.f32 %v2224_v57, %v484_v58  ;;  %v525_v35 = vpack.c.bf16 %v512_v49, %v511_v51  ;;  %v509_v55 = vmax.f32 %v493_v50, 0.0  ;;  %v859_v51 = vpop.permute.xlu2 %858 }
 0x19e   :  { %v520_v11 = vmax.f32 %v504_v2, 0.0  ;;  %v1794_v2 = vld [vmem:[#allocation2 + $0x28] sm:$0xff] }
 0x1a0   :  { %v529_v20 = vpack.c.bf16 %v520_v11, %v519_v15 }
 0x1a1   :  { %v370_v54 = vpop.f32.mrf.mxu1 }
 0x1a2   :  { %v485_v56 = vmul.f32 %v464_v45, %v370_v54  ;;  %v513_v45 = vmax.f32 %v497_v31, 0.0  ;;  %v491_v54 = vadd.f32 %v2224_v57, %v471_v36  ;;  %v854_v36 = vpop.permute.xlu1 %853 }
 0x1a4   :  { %v505_v63 = vadd.f32 %v2224_v57, %v485_v56  ;;  %v524_v56 = vpack.c.bf16 %v510_v53, %v509_v55  ;;  %v507_v58 = vmax.f32 %v491_v54, 0.0  ;;  %v834_v54 = vpop.permute.xlu2 %833 }
 0x1a6   :  { %v521_v6 = vmax.f32 %v505_v63, 0.0  ;;  %v523_v59 = vpack.c.bf16 %v508_v34, %v507_v58  ;;  %v1796_v63 = vld [vmem:[#allocation2 + $0x38] sm:$0xff] }
 0x1a7   :  { %716 = vmatpush.bf16.msra.mxu3 %v1796_v63 }
 0x1a9   :  { %v372_v60 = vpop.f32.mrf.mxu1 }
 0x1aa   :  { %v486_v62 = vmul.f32 %v469_v48, %v372_v60  ;;  %v526_v48 = vpack.c.bf16 %v514_v42, %v513_v45  ;;  %v1782_v60 = vld [vmem:[%s2383_s5 + $0x8] sm:$0xff]  ;;  %v849_v52 = vpop.permute.xlu1 %848 }
 0x1ab   :  { %717 = vmatpush.bf16.msra.mxu3 %v1795_v1 }
 0x1ac   :  { %v506_v3 = vadd.f32 %v2224_v57, %v486_v62  ;;  %v1783_v57 = vld [vmem:[%s2383_s5 + $0x10] sm:$0xff]  ;;  %v1785_v62 = vld [vmem:[%s2383_s5 + $0x20] sm:$0xff] }
 0x1ae   :  { %v522_v7 = vmax.f32 %v506_v3, 0.0  ;;  %v1793_v3 = vld [vmem:[#allocation2 + $0x20] sm:$0xff] }
 0x1af   :  { %718 = vmatpush.bf16.msra.mxu3 %v1794_v2 }
 0x1b0   :  { %v530_v12 = vpack.c.bf16 %v522_v7, %v521_v6  ;;  %v1791_v6 = vld [vmem:[#allocation2 + $0x10] sm:$0xff]  ;;  %v1790_v7 = vld [vmem:[#allocation2 + $0x8] sm:$0xff] }
 0x1b2   :  { %595 = vmatpush.bf16.msra.mxu2 %v530_v12  ;;  %v824_v55 = vpop.permute.xlu1 %823 }
 0x1b3   :  { %719 = vmatpush.bf16.msra.mxu3 %v1793_v3 }
 0x1b6   :  { %596 = vmatpush.bf16.msra.mxu2 %v529_v20 }
 0x1b7   :  { %720 = vmatpush.bf16.msra.mxu3 %v1792_v4 }
 0x1ba   :  { %597 = vmatpush.bf16.msra.mxu2 %v528_v28 }
 0x1bb   :  { %721 = vmatpush.bf16.msra.mxu3 %v1791_v6 }
 0x1be   :  { %598 = vmatpush.bf16.msra.mxu2 %v527_v39 }
 0x1bf   :  { %722 = vmatpush.bf16.msra.mxu3 %v1790_v7 }
 0x1c2   :  { %599 = vmatpush.bf16.msra.mxu2 %v526_v48 }
 0x1c3   :  { %723 = vmatpush.bf16.msra.mxu3 %v1789_v8 }
 0x1c6   :  { %600 = vmatpush.bf16.msra.mxu2 %v525_v35  ;;  %v844_v35 = vpop.permute.xlu0 %843 }
 0x1ca   :  { %601 = vmatpush.bf16.msra.mxu2 %v524_v56 }
 0x1ce   :  { %602 = vmatpush.bf16.msra.mxu2 %v523_v59  ;;  %v839_v34 = vpop.permute.xlu0 %838  ;;  %v829_v59 = vpop.permute.xlu2 %828 }
 0x1d1   :  { %603 = vmatmul.bf16.vlgmr.msra.gmra.mxu2 %v1781_v33  ;;  %v2283_v33 = vld [vmem:[%s2386_s8] ss:$0 sm:$0xff] }
 0x1d6   :  { %v814_v4 = vpop.permute.xlu0 %813 }
 0x1e1   :  { %608 = vmatmul.bf16.gmra.mxu2 %v1782_v60 }
 0x1f1   :  { %613 = vmatmul.bf16.gmra.mxu2 %v1783_v57 }
 0x201   :  { %618 = vmatmul.bf16.gmra.mxu2 %v1784_v61 }
 0x211   :  { %623 = vmatmul.bf16.gmra.mxu2 %v1785_v62 }
 0x221   :  { %628 = vmatmul.bf16.gmra.mxu2 %v1786_v0  ;;  %v819_v0 = vpop.permute.xlu1 %818 }
 0x231   :  { %633 = vmatmul.bf16.gmra.mxu2 %v1787_v5 }
 0x241   :  { %638 = vmatmul.bf16.gmra.mxu2 %v1788_v9 }
 0x254   :  { %v604_v10 = vpop.f32.mrf.mxu2 }
 0x25c   :  { %v606_v11 = vpop.f32.mrf.mxu2 }
 0x25d   :  { %v644_v12 = vpack.c.bf16 %v606_v11, %v604_v10 }
 0x25f   :  { %724 = vmatmul.bf16.vlgmr.msra.gmra.mxu3 %v644_v12 }
 0x264   :  { %v609_v13 = vpop.f32.mrf.mxu2 }
 0x26c   :  { %v611_v14 = vpop.f32.mrf.mxu2 }
 0x26d   :  { %v645_v15 = vpack.c.bf16 %v611_v14, %v609_v13  ;;  %v804_v14 = vpop.permute.xlu2 %803 }
 0x26f   :  { %729 = vmatmul.bf16.gmra.mxu3 %v645_v15 }
 0x274   :  { %v614_v16 = vpop.f32.mrf.mxu2 }
 0x27c   :  { %v616_v17 = vpop.f32.mrf.mxu2 }
 0x27d   :  { %v646_v18 = vpack.c.bf16 %v616_v17, %v614_v16 }
 0x27f   :  { %734 = vmatmul.bf16.gmra.mxu3 %v646_v18 }
 0x284   :  { %v619_v19 = vpop.f32.mrf.mxu2 }
 0x28c   :  { %v621_v20 = vpop.f32.mrf.mxu2 }
 0x28d   :  { %v647_v21 = vpack.c.bf16 %v621_v20, %v619_v19 }
 0x28f   :  { %739 = vmatmul.bf16.gmra.mxu3 %v647_v21 }
 0x294   :  { %v624_v22 = vpop.f32.mrf.mxu2 }
 0x29c   :  { %v626_v23 = vpop.f32.mrf.mxu2 }
 0x29d   :  { %v648_v24 = vpack.c.bf16 %v626_v23, %v624_v22  ;;  %v794_v23 = vpop.permute.xlu1 %793 }
 0x29f   :  { %744 = vmatmul.bf16.gmra.mxu3 %v648_v24 }
 0x2a4   :  { %v629_v25 = vpop.f32.mrf.mxu2 }
 0x2ac   :  { %v631_v26 = vpop.f32.mrf.mxu2 }
 0x2ad   :  { %v649_v27 = vpack.c.bf16 %v631_v26, %v629_v25 }
 0x2af   :  { %749 = vmatmul.bf16.gmra.mxu3 %v649_v27 }
 0x2b4   :  { %v634_v28 = vpop.f32.mrf.mxu2 }
 0x2bc   :  { %v636_v29 = vpop.f32.mrf.mxu2 }
 0x2bd   :  { %v650_v30 = vpack.c.bf16 %v636_v29, %v634_v28  ;;  %v809_v28 = vpop.permute.xlu0 %808 }
 0x2bf   :  { %754 = vmatmul.bf16.gmra.mxu3 %v650_v30 }
 0x2c4   :  { %v639_v31 = vpop.f32.mrf.mxu2 }
 0x2cc   :  { %v641_v32 = vpop.f32.mrf.mxu2 }
 0x2cd   :  { %v651_v40 = vpack.c.bf16 %v641_v32, %v639_v31 }
 0x2cf   :  { %759 = vmatmul.bf16.gmra.mxu3 %v651_v40 }
 0x2e2   :  { %v2270_v41 = vpop.f32.mrf.mxu3 }
 0x2ea   :  { %v2272_v39 = vpop.f32.mrf.mxu3 }
 0x2f2   :  { %v2274_v42 = vpop.f32.mrf.mxu3 }
 0x2fa   :  { %v2276_v43 = vpop.f32.mrf.mxu3 }
 0x302   :  { %v2278_v44 = vpop.f32.mrf.mxu3 }
 0x303   :  { %v865_v40 = vmul.f32 %v804_v14, %v2278_v44  ;;  %v1818_v14 = vld [vmem:[%s2389_s11 + $0x68] sm:$0xff] }
 0x30a   :  { %v737_v38 = vpop.f32.mrf.mxu3 }
 0x30b   :  { %v866_v29 = vmul.f32 %v809_v28, %v737_v38 }
 0x30d   :  { %v886_v38 = vadd.f32 %v2283_v33, %v866_v29 }
 0x312   :  { %v740_v45 = vpop.f32.mrf.mxu3 }
 0x313   :  { %v867_v24 = vmul.f32 %v814_v4, %v740_v45  ;;  %v799_v45 = vpop.permute.xlu2 %798 }
 0x31a   :  { %v742_v46 = vpop.f32.mrf.mxu3 }
 0x31b   :  { %v868_v19 = vmul.f32 %v819_v0, %v742_v46  ;;  %v887_v46 = vadd.f32 %v2283_v33, %v867_v24  ;;  %v1805_v24 = vld [vmem:[%s2389_s11] sm:$0xff] }
 0x31d   :  { %v888_v32 = vadd.f32 %v2283_v33, %v868_v19  ;;  %v903_v44 = vmax.f32 %v887_v46, 0.0  ;;  %v1807_v19 = vld [vmem:[%s2389_s11 + $0x10] sm:$0xff] }
 0x322   :  { %v745_v37 = vpop.f32.mrf.mxu3 }
 0x323   :  { %v869_v15 = vmul.f32 %v824_v55, %v745_v37  ;;  %v902_v55 = vmax.f32 %v886_v38, 0.0 }
 0x325   :  { %v889_v25 = vadd.f32 %v2283_v33, %v869_v15  ;;  %v1809_v15 = vld [vmem:[%s2389_s11 + $0x20] sm:$0xff] }
 0x32a   :  { %v747_v47 = vpop.f32.mrf.mxu3 }
 0x32b   :  { %v870_v10 = vmul.f32 %v829_v59, %v747_v47  ;;  %v905_v47 = vmax.f32 %v889_v25, 0.0 }
 0x32d   :  { %v890_v20 = vadd.f32 %v2283_v33, %v870_v10  ;;  %v1811_v10 = vld [vmem:[%s2389_s11 + $0x30] sm:$0xff] }
 0x32f   :  { %v906_v31 = vmax.f32 %v890_v20, 0.0  ;;  %v921_v37 = vpack.c.bf16 %v890_v20, %v889_v25  ;;  %v1803_v20 = vld [vmem:[#allocation5 + $0x30] sm:$0xff]  ;;  %v1813_v25 = vld [vmem:[%s2389_s11 + $0x40] sm:$0xff] }
 0x332   :  { %v750_v48 = vpop.f32.mrf.mxu3 }
 0x333   :  { %v871_v5 = vmul.f32 %v834_v54, %v750_v48  ;;  %v864_v48 = vmul.f32 %v799_v45, %v2276_v43 }
 0x335   :  { %v891_v16 = vadd.f32 %v2283_v33, %v871_v5  ;;  %v884_v43 = vadd.f32 %v2283_v33, %v864_v48  ;;  %v1798_v5 = vld [vmem:[#allocation5 + $0x8] sm:$0xff] }
 0x337   :  { %v907_v27 = vmax.f32 %v891_v16, 0.0 }
 0x33a   :  { %v752_v49 = vpop.f32.mrf.mxu3 }
 0x33b   :  { %v872_v1 = vmul.f32 %v839_v34, %v752_v49  ;;  %v922_v49 = vpack.c.bf16 %v906_v31, %v905_v47 }
 0x33d   :  { %v892_v11 = vadd.f32 %v2283_v33, %v872_v1 }
 0x33f   :  { %v908_v22 = vmax.f32 %v892_v11, 0.0  ;;  %v923_v26 = vpack.c.bf16 %v892_v11, %v891_v16  ;;  %v1819_v11 = vld [vmem:[%s2389_s11 + $0x70] sm:$0xff]  ;;  %v1817_v16 = vld [vmem:[%s2389_s11 + $0x60] sm:$0xff] }
 0x341   :  { %v924_v30 = vpack.c.bf16 %v908_v22, %v907_v27  ;;  %v1806_v22 = vld [vmem:[%s2389_s11 + $0x8] sm:$0xff] }
 0x342   :  { %v755_v50 = vpop.f32.mrf.mxu3 }
 0x343   :  { %v873_v61 = vmul.f32 %v844_v35, %v755_v50  ;;  %v863_v50 = vmul.f32 %v794_v23, %v2274_v42  ;;  %v789_v35 = vpop.permute.xlu1 %788  ;;  %v1814_v23 = vld [vmem:[%s2389_s11 + $0x48] sm:$0xff] }
 0x345   :  { %v893_v6 = vadd.f32 %v2283_v33, %v873_v61 }
 0x347   :  { %v909_v18 = vmax.f32 %v893_v6, 0.0 }
 0x34a   :  { %v757_v53 = vpop.f32.mrf.mxu3 }
 0x34b   :  { %v874_v60 = vmul.f32 %v849_v52, %v757_v53  ;;  %v919_v52 = vpack.c.bf16 %v888_v32, %v887_v46  ;;  %v862_v53 = vmul.f32 %v789_v35, %v2272_v39 }
 0x34d   :  { %v894_v2 = vadd.f32 %v2283_v33, %v874_v60  ;;  %v882_v61 = vadd.f32 %v2283_v33, %v862_v53 }
 0x34f   :  { %v910_v13 = vmax.f32 %v894_v2, 0.0  ;;  %v925_v17 = vpack.c.bf16 %v894_v2, %v893_v6  ;;  %v898_v1 = vmax.f32 %v882_v61, 0.0  ;;  %v1799_v6 = vld [vmem:[#allocation5 + $0x10] sm:$0xff] }
 0x351   :  { %v926_v21 = vpack.c.bf16 %v910_v13, %v909_v18  ;;  %v1810_v13 = vld [vmem:[%s2389_s11 + $0x28] sm:$0xff]  ;;  %v1816_v18 = vld [vmem:[%s2389_s11 + $0x58] sm:$0xff] }
 0x352   :  { %v760_v56 = vpop.f32.mrf.mxu3 }
 0x353   :  { %v875_v58 = vmul.f32 %v854_v36, %v760_v56  ;;  %v904_v36 = vmax.f32 %v888_v32, 0.0  ;;  %v784_v56 = vpop.permute.xlu0 %783 }
 0x354   :  { %v861_v34 = vmul.f32 %v784_v56, %v2270_v41 }
 0x355   :  { %v895_v62 = vadd.f32 %v2283_v33, %v875_v58  ;;  %v920_v54 = vpack.c.bf16 %v904_v36, %v903_v44  ;;  %v883_v58 = vadd.f32 %v2283_v33, %v863_v50 }
 0x356   :  { %v881_v39 = vadd.f32 %v2283_v33, %v861_v34 }
 0x357   :  { %v911_v8 = vmax.f32 %v895_v62, 0.0 }
 0x358   :  { %v913_v41 = vpack.c.bf16 %v882_v61, %v881_v39  ;;  %v897_v2 = vmax.f32 %v881_v39, 0.0 }
 0x35a   :  { %v762_v57 = vpop.f32.mrf.mxu3  ;;  %v914_v4 = vpack.c.bf16 %v898_v1, %v897_v2 }
 0x35b   :  { %v876_v63 = vmul.f32 %v859_v51, %v762_v57  ;;  %v885_v51 = vadd.f32 %v2283_v33, %v865_v40  ;;  %v900_v57 = vmax.f32 %v884_v43, 0.0 }
 0x35d   :  { %v896_v3 = vadd.f32 %v2283_v33, %v876_v63  ;;  %v917_v42 = vpack.c.bf16 %v886_v38, %v885_v51  ;;  %v901_v59 = vmax.f32 %v885_v51, 0.0  ;;  %v899_v63 = vmax.f32 %v883_v58, 0.0  ;;  %v1800_v33 = vld [vmem:[#allocation5 + $0x18] sm:$0xff] }
 0x35f   :  { %v927_v7 = vpack.c.bf16 %v896_v3, %v895_v62  ;;  %v912_v9 = vmax.f32 %v896_v3, 0.0  ;;  %v918_v60 = vpack.c.bf16 %v902_v55, %v901_v59  ;;  %v915_v62 = vpack.c.bf16 %v884_v43, %v883_v58  ;;  %v1797_v3 = vld [vmem:[#allocation5] sm:$0xff] }
 0x360   :  { %v916_v0 = vpack.c.bf16 %v900_v57, %v899_v63 }
 0x361   :  { %993 = vmatpush.bf16.msrb.mxu0 %v927_v7  ;;  %v928_v12 = vpack.c.bf16 %v912_v9, %v911_v8  ;;  %v1801_v7 = vld [vmem:[#allocation5 + $0x20] sm:$0xff]  ;;  %v1812_v8 = vld [vmem:[%s2389_s11 + $0x38] sm:$0xff] }
 0x362   :  { %v1820_v9 = vld [vmem:[%s2389_s11 + $0x78] sm:$0xff]  ;;  %1235 = vmatpush.bf16.msrb.mxu2 %v1812_v8 }
 0x363   :  { %1042 = vmatpush.bf16.msrb.mxu1 %v928_v12  ;;  %1284 = vmatpush.bf16.msrb.mxu3 %v1820_v9  ;;  %v1802_v12 = vld [vmem:[#allocation5 + $0x28] sm:$0xff] }
 0x365   :  { %994 = vmatpush.bf16.msrb.mxu0 %v925_v17  ;;  %v1808_v17 = vld [vmem:[%s2389_s11 + $0x18] sm:$0xff] }
 0x366   :  { %1236 = vmatpush.bf16.msrb.mxu2 %v1811_v10 }
 0x367   :  { %1043 = vmatpush.bf16.msrb.mxu1 %v926_v21  ;;  %1285 = vmatpush.bf16.msrb.mxu3 %v1819_v11  ;;  %v1815_v21 = vld [vmem:[%s2389_s11 + $0x50] sm:$0xff] }
 0x369   :  { %995 = vmatpush.bf16.msrb.mxu0 %v923_v26  ;;  %v1804_v26 = vld [vmem:[#allocation5 + $0x38] sm:$0xff] }
 0x36a   :  { %1237 = vmatpush.bf16.msrb.mxu2 %v1810_v13 }
 0x36b   :  { %1044 = vmatpush.bf16.msrb.mxu1 %v924_v30  ;;  %1286 = vmatpush.bf16.msrb.mxu3 %v1818_v14  ;;  %v2357_v14 = vld [vmem:[%s2390_s12] ss:$0 sm:$0xff]  ;;  %s1918_s12 = smov [#allocation7]  }
 0x36c   :  { %s1485_s27 = sshll.u32 %s1918_s12, 4  ;;  %s1486_s27 = int_to_ptr.vmem [resolvable:$true] %s1485_s27 }
 0x36d   :  { %996 = vmatpush.bf16.msrb.mxu0 %v921_v37 }
 0x36e   :  { %1238 = vmatpush.bf16.msrb.mxu2 %v1809_v15  ;;  %v1352_v15 = vpop.permute.xlu2 %1351 }
 0x36f   :  { %1045 = vmatpush.bf16.msrb.mxu1 %v922_v49  ;;  %1287 = vmatpush.bf16.msrb.mxu3 %v1817_v16 }
 0x371   :  { %997 = vmatpush.bf16.msrb.mxu0 %v919_v52 }
 0x372   :  { %1239 = vmatpush.bf16.msrb.mxu2 %v1808_v17 }
 0x373   :  { %1046 = vmatpush.bf16.msrb.mxu1 %v920_v54  ;;  %1288 = vmatpush.bf16.msrb.mxu3 %v1816_v18 }
 0x375   :  { %998 = vmatpush.bf16.msrb.mxu0 %v917_v42 }
 0x376   :  { %1240 = vmatpush.bf16.msrb.mxu2 %v1807_v19 }
 0x377   :  { %1047 = vmatpush.bf16.msrb.mxu1 %v918_v60  ;;  %1289 = vmatpush.bf16.msrb.mxu3 %v1815_v21  ;;  %v1357_v21 = vpop.permute.xlu0 %1356 }
 0x379   :  { %999 = vmatpush.bf16.msrb.mxu0 %v915_v62 }
 0x37a   :  { %1241 = vmatpush.bf16.msrb.mxu2 %v1806_v22 }
 0x37b   :  { %1048 = vmatpush.bf16.msrb.mxu1 %v916_v0  ;;  %1290 = vmatpush.bf16.msrb.mxu3 %v1814_v23 }
 0x37d   :  { %1000 = vmatpush.bf16.msrb.mxu0 %v913_v41 }
 0x37e   :  { %1242 = vmatpush.bf16.msrb.mxu2 %v1805_v24 }
 0x37f   :  { %1049 = vmatpush.bf16.msrb.mxu1 %v914_v4  ;;  %1291 = vmatpush.bf16.msrb.mxu3 %v1813_v25 }
 0x380   :  { %1001 = vmatmul.bf16.vlgmr.msrb.gmra.mxu0 %v1797_v3 }
 0x382   :  { %1050 = vmatmul.bf16.vlgmr.msrb.gmra.mxu1 %v1797_v3 }
 0x390   :  { %1006 = vmatmul.bf16.gmra.mxu0 %v1798_v5 }
 0x392   :  { %1055 = vmatmul.bf16.gmra.mxu1 %v1798_v5 }
 0x3a0   :  { %1011 = vmatmul.bf16.gmra.mxu0 %v1799_v6 }
 0x3a2   :  { %1060 = vmatmul.bf16.gmra.mxu1 %v1799_v6 }
 0x3b0   :  { %1016 = vmatmul.bf16.gmra.mxu0 %v1800_v33 }
 0x3b2   :  { %1065 = vmatmul.bf16.gmra.mxu1 %v1800_v33 }
 0x3c0   :  { %1021 = vmatmul.bf16.gmra.mxu0 %v1801_v7 }
 0x3c2   :  { %1070 = vmatmul.bf16.gmra.mxu1 %v1801_v7 }
 0x3d0   :  { %1026 = vmatmul.bf16.gmra.mxu0 %v1802_v12 }
 0x3d2   :  { %1075 = vmatmul.bf16.gmra.mxu1 %v1802_v12 }
 0x3e0   :  { %1031 = vmatmul.bf16.gmra.mxu0 %v1803_v20 }
 0x3e2   :  { %1080 = vmatmul.bf16.gmra.mxu1 %v1803_v20 }
 0x3f0   :  { %1036 = vmatmul.bf16.gmra.mxu0 %v1804_v26 }
 0x3f2   :  { %1085 = vmatmul.bf16.gmra.mxu1 %v1804_v26 }
 0x3fd   :  { %v1002_v27 = vpop.f32.mrf.mxu0 }
 0x3ff   :  { %v1051_v28 = vpop.f32.mrf.mxu1 }
 0x405   :  { %v1004_v29 = vpop.f32.mrf.mxu0 }
 0x406   :  { %v1091_v30 = vpack.c.bf16 %v1004_v29, %v1002_v27  ;;  %v1362_v27 = vpop.permute.xlu1 %1361 }
 0x407   :  { %v1053_v31 = vpop.f32.mrf.mxu1 }
 0x408   :  { %v1092_v32 = vpack.c.bf16 %v1053_v31, %v1051_v28  ;;  %1243 = vmatmul.bf16.vlgmr.msrb.gmra.mxu2 %v1091_v30 }
 0x40a   :  { %1292 = vmatmul.bf16.vlgmr.msrb.gmra.mxu3 %v1092_v32 }
 0x40d   :  { %v1007_v40 = vpop.f32.mrf.mxu0 }
 0x40f   :  { %v1056_v46 = vpop.f32.mrf.mxu1 }
 0x415   :  { %v1009_v37 = vpop.f32.mrf.mxu0 }
 0x416   :  { %v1093_v47 = vpack.c.bf16 %v1009_v37, %v1007_v40  ;;  %v1367_v40 = vpop.permute.xlu2 %1366 }
 0x417   :  { %v1058_v45 = vpop.f32.mrf.mxu1 }
 0x418   :  { %v1094_v48 = vpack.c.bf16 %v1058_v45, %v1056_v46  ;;  %1248 = vmatmul.bf16.gmra.mxu2 %v1093_v47 }
 0x41a   :  { %1297 = vmatmul.bf16.gmra.mxu3 %v1094_v48 }
 0x41d   :  { %v1012_v49 = vpop.f32.mrf.mxu0 }
 0x41f   :  { %v1061_v36 = vpop.f32.mrf.mxu1 }
 0x425   :  { %v1014_v38 = vpop.f32.mrf.mxu0 }
 0x426   :  { %v1095_v50 = vpack.c.bf16 %v1014_v38, %v1012_v49  ;;  %v1372_v49 = vpop.permute.xlu0 %1371 }
 0x427   :  { %v1063_v51 = vpop.f32.mrf.mxu1 }
 0x428   :  { %v1096_v52 = vpack.c.bf16 %v1063_v51, %v1061_v36  ;;  %1253 = vmatmul.bf16.gmra.mxu2 %v1095_v50 }
 0x42a   :  { %1302 = vmatmul.bf16.gmra.mxu3 %v1096_v52 }
 0x42d   :  { %v1017_v44 = vpop.f32.mrf.mxu0 }
 0x42f   :  { %v1066_v35 = vpop.f32.mrf.mxu1 }
 0x435   :  { %v1019_v53 = vpop.f32.mrf.mxu0 }
 0x436   :  { %v1097_v54 = vpack.c.bf16 %v1019_v53, %v1017_v44  ;;  %v1377_v44 = vpop.permute.xlu1 %1376 }
 0x437   :  { %v1068_v55 = vpop.f32.mrf.mxu1 }
 0x438   :  { %v1098_v43 = vpack.c.bf16 %v1068_v55, %v1066_v35  ;;  %1258 = vmatmul.bf16.gmra.mxu2 %v1097_v54 }
 0x43a   :  { %1307 = vmatmul.bf16.gmra.mxu3 %v1098_v43 }
 0x43d   :  { %v1022_v56 = vpop.f32.mrf.mxu0 }
 0x43f   :  { %v1071_v34 = vpop.f32.mrf.mxu1 }
 0x445   :  { %v1024_v58 = vpop.f32.mrf.mxu0 }
 0x446   :  { %v1099_v42 = vpack.c.bf16 %v1024_v58, %v1022_v56  ;;  %v1382_v56 = vpop.permute.xlu2 %1381 }
 0x447   :  { %v1073_v59 = vpop.f32.mrf.mxu1 }
 0x448   :  { %v1100_v60 = vpack.c.bf16 %v1073_v59, %v1071_v34  ;;  %1263 = vmatmul.bf16.gmra.mxu2 %v1099_v42 }
 0x44a   :  { %1312 = vmatmul.bf16.gmra.mxu3 %v1100_v60 }
 0x44d   :  { %v1027_v57 = vpop.f32.mrf.mxu0 }
 0x44f   :  { %v1076_v61 = vpop.f32.mrf.mxu1 }
 0x455   :  { %v1029_v39 = vpop.f32.mrf.mxu0 }
 0x456   :  { %v1101_v62 = vpack.c.bf16 %v1029_v39, %v1027_v57  ;;  %v1387_v57 = vpop.permute.xlu0 %1386 }
 0x457   :  { %v1078_v63 = vpop.f32.mrf.mxu1 }
 0x458   :  { %v1102_v0 = vpack.c.bf16 %v1078_v63, %v1076_v61  ;;  %1268 = vmatmul.bf16.gmra.mxu2 %v1101_v62 }
 0x45a   :  { %1317 = vmatmul.bf16.gmra.mxu3 %v1102_v0 }
 0x45d   :  { %v1032_v1 = vpop.f32.mrf.mxu0 }
 0x45f   :  { %v1081_v41 = vpop.f32.mrf.mxu1 }
 0x465   :  { %v1034_v2 = vpop.f32.mrf.mxu0 }
 0x466   :  { %v1103_v3 = vpack.c.bf16 %v1034_v2, %v1032_v1  ;;  %v1392_v1 = vpop.permute.xlu1 %1391 }
 0x467   :  { %v1083_v4 = vpop.f32.mrf.mxu1 }
 0x468   :  { %v1104_v5 = vpack.c.bf16 %v1083_v4, %v1081_v41  ;;  %1273 = vmatmul.bf16.gmra.mxu2 %v1103_v3 }
 0x46a   :  { %1322 = vmatmul.bf16.gmra.mxu3 %v1104_v5 }
 0x46d   :  { %v1037_v6 = vpop.f32.mrf.mxu0 }
 0x46f   :  { %v1086_v33 = vpop.f32.mrf.mxu1 }
 0x475   :  { %v1039_v7 = vpop.f32.mrf.mxu0 }
 0x476   :  { %v1105_v8 = vpack.c.bf16 %v1039_v7, %v1037_v6  ;;  %v1397_v6 = vpop.permute.xlu2 %1396 }
 0x477   :  { %v1088_v9 = vpop.f32.mrf.mxu1 }
 0x478   :  { %v1106_v10 = vpack.c.bf16 %v1088_v9, %v1086_v33  ;;  %1278 = vmatmul.bf16.gmra.mxu2 %v1105_v8 }
 0x47a   :  { %1327 = vmatmul.bf16.gmra.mxu3 %v1106_v10 }
 0x48b   :  { %v1244_v11 = vpop.f32.mrf.mxu2 }
 0x48d   :  { %v1293_v12 = vpop.f32.mrf.mxu3 }
 0x48e   :  { %v1294_v13 = vadd.f32 %v1293_v12, %v1244_v11  ;;  %v1402_v11 = vpop.permute.xlu0 %1401 }
 0x490   :  { %v1429_v16 = vmul.f32 %v1352_v15, %v1294_v13 }
 0x492   :  { %v1449_v17 = vadd.f32 %v2357_v14, %v1429_v16 }
 0x493   :  { %v1246_v18 = vpop.f32.mrf.mxu2 }
 0x494   :  { %1465 = vst [vmem:[#allocation7] sm:$0xff] %v1449_v17 }
 0x495   :  { %v1295_v19 = vpop.f32.mrf.mxu3 }
 0x496   :  { %v1296_v20 = vadd.f32 %v1295_v19, %v1246_v18  ;;  %v1407_v18 = vpop.permute.xlu1 %1406 }
 0x498   :  { %v1430_v22 = vmul.f32 %v1357_v21, %v1296_v20 }
 0x49a   :  { %v1450_v23 = vadd.f32 %v2357_v14, %v1430_v22 }
 0x49b   :  { %v1249_v24 = vpop.f32.mrf.mxu2 }
 0x49c   :  { %1466 = vst [vmem:[#allocation7 + $0x8] sm:$0xff] %v1450_v23 }
 0x49d   :  { %v1298_v25 = vpop.f32.mrf.mxu3 }
 0x49e   :  { %v1299_v26 = vadd.f32 %v1298_v25, %v1249_v24  ;;  %v1412_v24 = vpop.permute.xlu2 %1411 }
 0x4a0   :  { %v1431_v28 = vmul.f32 %v1362_v27, %v1299_v26 }
 0x4a2   :  { %v1451_v29 = vadd.f32 %v2357_v14, %v1431_v28 }
 0x4a3   :  { %v1251_v30 = vpop.f32.mrf.mxu2 }
 0x4a4   :  { %1467 = vst [vmem:[#allocation7 + $0x10] sm:$0xff] %v1451_v29 }
 0x4a5   :  { %v1300_v31 = vpop.f32.mrf.mxu3 }
 0x4a6   :  { %v1301_v32 = vadd.f32 %v1300_v31, %v1251_v30  ;;  %v1417_v30 = vpop.permute.xlu0 %1416 }
 0x4a8   :  { %v1432_v46 = vmul.f32 %v1367_v40, %v1301_v32 }
 0x4aa   :  { %v1452_v37 = vadd.f32 %v2357_v14, %v1432_v46 }
 0x4ab   :  { %v1254_v47 = vpop.f32.mrf.mxu2 }
 0x4ac   :  { %1468 = vst [vmem:[#allocation7 + $0x18] sm:$0xff] %v1452_v37 }
 0x4ad   :  { %v1303_v45 = vpop.f32.mrf.mxu3 }
 0x4ae   :  { %v1304_v48 = vadd.f32 %v1303_v45, %v1254_v47  ;;  %v1422_v47 = vpop.permute.xlu1 %1421 }
 0x4b0   :  { %v1433_v36 = vmul.f32 %v1372_v49, %v1304_v48 }
 0x4b2   :  { %v1453_v38 = vadd.f32 %v2357_v14, %v1433_v36 }
 0x4b3   :  { %v1256_v50 = vpop.f32.mrf.mxu2 }
 0x4b4   :  { %1469 = vst [vmem:[#allocation7 + $0x20] sm:$0xff] %v1453_v38 }
 0x4b5   :  { %v1305_v51 = vpop.f32.mrf.mxu3 }
 0x4b6   :  { %v1306_v52 = vadd.f32 %v1305_v51, %v1256_v50  ;;  %v1427_v50 = vpop.permute.xlu2 %1426 }
 0x4b8   :  { %v1434_v35 = vmul.f32 %v1377_v44, %v1306_v52 }
 0x4ba   :  { %v1454_v53 = vadd.f32 %v2357_v14, %v1434_v35 }
 0x4bb   :  { %v1259_v54 = vpop.f32.mrf.mxu2 }
 0x4bc   :  { %1470 = vst [vmem:[#allocation7 + $0x28] sm:$0xff] %v1454_v53 }
 0x4bd   :  { %v1308_v55 = vpop.f32.mrf.mxu3 }
 0x4be   :  { %v1309_v43 = vadd.f32 %v1308_v55, %v1259_v54 }
 0x4c0   :  { %v1435_v34 = vmul.f32 %v1382_v56, %v1309_v43 }
 0x4c2   :  { %v1455_v58 = vadd.f32 %v2357_v14, %v1435_v34 }
 0x4c3   :  { %v1261_v42 = vpop.f32.mrf.mxu2 }
 0x4c4   :  { %1471 = vst [vmem:[#allocation7 + $0x30] sm:$0xff] %v1455_v58 }
 0x4c5   :  { %v1310_v59 = vpop.f32.mrf.mxu3 }
 0x4c6   :  { %v1311_v60 = vadd.f32 %v1310_v59, %v1261_v42 }
 0x4c8   :  { %v1436_v61 = vmul.f32 %v1387_v57, %v1311_v60 }
 0x4ca   :  { %v1456_v39 = vadd.f32 %v2357_v14, %v1436_v61 }
 0x4cb   :  { %v1264_v62 = vpop.f32.mrf.mxu2 }
 0x4cc   :  { %1472 = vst [vmem:[#allocation7 + $0x38] sm:$0xff] %v1456_v39 }
 0x4cd   :  { %v1313_v63 = vpop.f32.mrf.mxu3 }
 0x4ce   :  { %v1314_v0 = vadd.f32 %v1313_v63, %v1264_v62 }
 0x4d0   :  { %v1437_v41 = vmul.f32 %v1392_v1, %v1314_v0 }
 0x4d2   :  { %v1457_v2 = vadd.f32 %v2357_v14, %v1437_v41 }
 0x4d3   :  { %v1266_v3 = vpop.f32.mrf.mxu2 }
 0x4d4   :  { %1473 = vst [vmem:[#allocation7 + $0x40] sm:$0xff] %v1457_v2 }
 0x4d5   :  { %v1315_v4 = vpop.f32.mrf.mxu3 }
 0x4d6   :  { %v1316_v5 = vadd.f32 %v1315_v4, %v1266_v3 }
 0x4d8   :  { %v1438_v33 = vmul.f32 %v1397_v6, %v1316_v5 }
 0x4da   :  { %v1458_v7 = vadd.f32 %v2357_v14, %v1438_v33 }
 0x4db   :  { %v1269_v8 = vpop.f32.mrf.mxu2 }
 0x4dc   :  { %1474 = vst [vmem:[#allocation7 + $0x48] sm:$0xff] %v1458_v7 }
 0x4dd   :  { %v1318_v9 = vpop.f32.mrf.mxu3 }
 0x4de   :  { %v1319_v10 = vadd.f32 %v1318_v9, %v1269_v8 }
 0x4e0   :  { %v1439_v12 = vmul.f32 %v1402_v11, %v1319_v10 }
 0x4e2   :  { %v1459_v13 = vadd.f32 %v2357_v14, %v1439_v12 }
 0x4e3   :  { %v1271_v15 = vpop.f32.mrf.mxu2 }
 0x4e4   :  { %1475 = vst [vmem:[#allocation7 + $0x50] sm:$0xff] %v1459_v13 }
 0x4e5   :  { %v1320_v16 = vpop.f32.mrf.mxu3 }
 0x4e6   :  { %v1321_v17 = vadd.f32 %v1320_v16, %v1271_v15 }
 0x4e8   :  { %v1440_v19 = vmul.f32 %v1407_v18, %v1321_v17 }
 0x4ea   :  { %v1460_v20 = vadd.f32 %v2357_v14, %v1440_v19 }
 0x4eb   :  { %v1274_v21 = vpop.f32.mrf.mxu2 }
 0x4ec   :  { %1476 = vst [vmem:[#allocation7 + $0x58] sm:$0xff] %v1460_v20 }
 0x4ed   :  { %v1323_v22 = vpop.f32.mrf.mxu3 }
 0x4ee   :  { %v1324_v23 = vadd.f32 %v1323_v22, %v1274_v21 }
 0x4f0   :  { %v1441_v25 = vmul.f32 %v1412_v24, %v1324_v23 }
 0x4f2   :  { %v1461_v26 = vadd.f32 %v2357_v14, %v1441_v25 }
 0x4f3   :  { %v1276_v27 = vpop.f32.mrf.mxu2 }
 0x4f4   :  { %1477 = vst [vmem:[#allocation7 + $0x60] sm:$0xff] %v1461_v26 }
 0x4f5   :  { %v1325_v28 = vpop.f32.mrf.mxu3 }
 0x4f6   :  { %v1326_v29 = vadd.f32 %v1325_v28, %v1276_v27 }
 0x4f8   :  { %v1442_v31 = vmul.f32 %v1417_v30, %v1326_v29 }
 0x4fa   :  { %v1462_v32 = vadd.f32 %v2357_v14, %v1442_v31 }
 0x4fb   :  { %v1279_v40 = vpop.f32.mrf.mxu2 }
 0x4fc   :  { %1478 = vst [vmem:[#allocation7 + $0x68] sm:$0xff] %v1462_v32 }
 0x4fd   :  { %v1328_v46 = vpop.f32.mrf.mxu3 }
 0x4fe   :  { %v1329_v37 = vadd.f32 %v1328_v46, %v1279_v40 }
 0x500   :  { %v1443_v45 = vmul.f32 %v1422_v47, %v1329_v37 }
 0x502   :  { %v1463_v48 = vadd.f32 %v2357_v14, %v1443_v45 }
 0x503   :  { %v1281_v49 = vpop.f32.mrf.mxu2 }
 0x504   :  { %1479 = vst [vmem:[#allocation7 + $0x70] sm:$0xff] %v1463_v48 }
 0x505   :  { %v1330_v36 = vpop.f32.mrf.mxu3 }
 0x506   :  { %v1331_v38 = vadd.f32 %v1330_v36, %v1281_v49 }
 0x508   :  { %v1444_v51 = vmul.f32 %v1427_v50, %v1331_v38 }
 0x50a   :  { %v1464_v52 = vadd.f32 %v2357_v14, %v1444_v51 }
 0x50c   :  { %1480 = vst [vmem:[#allocation7 + $0x78] sm:$0xff] %v1464_v52 }
 0x50d   :  { %1493 = dma.vmem_to_hbm [thread:$0]  %s1486_s27, 2048, %s1488_s10, [#allocation4], %s1919_s30, %s1919_s30, %s1920_s4  }
 0x50e   :  { %1911 = dma.done.wait [#allocation4], 2048  }
 0x50f   :  { %1912 = vsyncadd [#allocation4], 4294965248 }
 0x510   :  { %1498 = vsyncpa [#allocation3], 1 }
 0x511   :  { %1499 = vsyncpa [#allocation6], 1 }
 0x512   :  { %1500 = vsyncpa [#allocation4], 1 }

</bundles_post_ra>
